<compile_context>
chip_gen: v6e
topology: v6e:2x2x1
jax: 0.10.0
libtpu: 0.0.40
codegen_flags: <defaults>
</compile_context>

<pallas_src>
import jax
import jax.numpy as jnp
from jax import lax
from jax.experimental import pallas as pl
from jax.experimental.pallas import tpu as pltpu


def neg_loss_kernel(latent_ref, samples_ref, out_ref):
    latent = latent_ref[...]                      # (bb, S, E) f32
    ns = samples_ref.shape[1]

    def nt_dot(x, y):
        # batched NT matmul contracting E: (bb,S,E) x (bb,S,E) -> (bb,S,S), f32 accumulation.
        return lax.dot_general(
            x, y,
            dimension_numbers=(((2,), (2,)), ((0,), (0,))),
            preferred_element_type=jnp.float32)

    # One (S, S) MXU matmul per sample slot; samples_ref[:, k] is a leading-axis slice of the
    # (bb, NS, S, E) tile -> whole (S, E) sub-tiles, no sublane-strided relayout.
    scores = [nt_dot(latent, samples_ref[:, k]) for k in range(ns)]

    # Positive scores: the torch module concatenates output_emb as the LAST sample slot,
    # so no separate latent @ output.T matmul (and no output_emb input) is needed.
    pos = scores[ns - 1]

    m = scores[0]
    for s in scores[1:]:
        m = jnp.maximum(m, s)                     # max over the sample axis (dim=3 in torch)

    ex_sum = jnp.zeros_like(m)
    for s in scores:
        ex_sum = ex_sum + jnp.exp(s - m)          # sum_k exp(score - m)

    # log(exp(pos - m) / ex_sum) == pos - m - log(ex_sum)   (fewer exps, no divide)
    out_ref[...] = pos - m - jnp.log(ex_sum)      # (bb, S, S)


def neg_loss_pallas(input_latent, samples_bnse, *, batch_block=None):
    """input_latent: (B, S, E) f32; samples_bnse: (B, NS, S, E) f32 (output emb = slot NS-1)."""
    B, S, E = input_latent.shape
    NS = samples_bnse.shape[1]

    if batch_block is None:
        # Pack as many batches per grid step as comfortably fit in VMEM (double-buffered),
        # collapsing the grid at small shapes; pick a divisor of B so blocks tile exactly.
        per_batch_bytes = 4 * (S * E + NS * S * E + S * S)
        cap = max(1, (8 << 20) // max(per_batch_bytes, 1))
        batch_block = 1
        for d in range(1, B + 1):
            if B % d == 0 and d <= cap:
                batch_block = d
    bb = batch_block
    assert B % bb == 0, "batch_block must divide the batch dimension"

    return pl.pallas_call(
        neg_loss_kernel,
        out_shape=jax.ShapeDtypeStruct((B, S, S), jnp.float32),
        grid=(B // bb,),
        in_specs=[
            pl.BlockSpec((bb, S, E), lambda b: (b, 0, 0)),
            pl.BlockSpec((bb, NS, S, E), lambda b: (b, 0, 0, 0)),
        ],
        out_specs=pl.BlockSpec((bb, S, S), lambda b: (b, 0, 0)),
        compiler_params=pltpu.CompilerParams(dimension_semantics=("parallel",)),
    )(input_latent, samples_bnse)


def neg_loss_forward(embedding_weight, input_latent, target_labels, batch_samples,
                     num_sample):
    """Embedding lookups + concat/layout in plain JAX; the hot path runs in the Pallas kernel."""
    B, S, E = input_latent.shape
    # out_embedding(target_labels) -> (B, S, E)
    output_emb = jnp.take(embedding_weight, target_labels, axis=0)
    # out_embedding(batch_samples) -> (B, S, num_sample-1, E)
    batch_sampled = jnp.take(embedding_weight, batch_samples, axis=0)
    batch_sampled = batch_sampled.reshape(B, S, num_sample - 1, E)
    # cat((batch_sampled, output[:, :, None, :]), dim=2) -> (B, S, num_sample, E)
    samples_emb = jnp.concatenate([batch_sampled, output_emb[:, :, None, :]], axis=2)
    # Move NS to a leading axis so in-kernel per-slot slices are whole (S, E) tile views.
    samples_bnse = jnp.transpose(samples_emb, (0, 2, 1, 3)).astype(jnp.float32)
    return neg_loss_pallas(input_latent.astype(jnp.float32), samples_bnse)


if __name__ == "__main__":
    # Small shapes consistent with the module's forward.
    B, S, E = 2, 8, 32          # batch, sent_len, embed_dim
    NUM_SAMPLE = 4
    NUM_CLASSES = 50

    key = jax.random.PRNGKey(0)
    k_w, k_lat, k_tgt, k_smp = jax.random.split(key, 4)

    # Deterministic synthetic "out_embedding" weight (nn.Embedding(num_classes, embed_dim)).
    embedding_weight = jax.random.normal(k_w, (NUM_CLASSES, E), dtype=jnp.float32)
    input_latent = jax.random.normal(k_lat, (B, S, E), dtype=jnp.float32)
    target_labels = jax.random.randint(k_tgt, (B, S), 0, NUM_CLASSES, dtype=jnp.int32)
    batch_samples = jax.random.randint(
        k_smp, (B, S, NUM_SAMPLE - 1), 0, NUM_CLASSES, dtype=jnp.int32)

    result = neg_loss_forward(embedding_weight, input_latent, target_labels,
                              batch_samples, NUM_SAMPLE)
    result = jax.block_until_ready(result)

    # Pure-JAX reference (same math as the PyTorch module) for a sanity check.
    output_emb = jnp.take(embedding_weight, target_labels, axis=0)
    batch_sampled = jnp.take(embedding_weight, batch_samples, axis=0).reshape(
        B, S, NUM_SAMPLE - 1, E)
    samples_emb = jnp.concatenate([batch_sampled, output_emb[:, :, None, :]], axis=2)
    pos_ref = jnp.einsum('bie,bje->bij', input_latent, output_emb)
    sc_ref = jnp.einsum('bie,bjke->bijk', input_latent, samples_emb)
    m_ref = jnp.max(sc_ref, axis=3)
    ref = jnp.log(jnp.exp(pos_ref - m_ref) /
                  jnp.sum(jnp.exp(sc_ref - m_ref[..., None]), axis=3))
    assert result.shape == (B, S, S)
    assert jnp.allclose(result, ref, atol=1e-5, rtol=1e-5)

    print("KERNEL_OK")
</pallas_src>

<mosaic_0001>
module attributes {stable_mosaic.version = 11 : i64} {
  func.func @neg_loss_kernel(%arg0: i32, %arg1: memref<2x8x32xf32, #tpu.memory_space<vmem>>, %arg2: memref<2x4x8x32xf32, #tpu.memory_space<vmem>>, %arg3: memref<2x8x8xf32, #tpu.memory_space<vmem>>) attributes {dimension_semantics = [#tpu.dimension_semantics<parallel>], iteration_bounds = array<i64: 1>, scalar_prefetch = 0 : i64, scratch_operands = 0 : i64, tpu.core_type = #tpu.core_type<tc>, window_params = [{transform_indices = @transform_0, window_bounds = array<i64: 2, 8, 32>}, {transform_indices = @transform_1, window_bounds = array<i64: 2, 4, 8, 32>}, {transform_indices = @transform_2, window_bounds = array<i64: 2, 8, 8>}]} {
    %c0 = arith.constant 0 : index
    %c0_0 = arith.constant 0 : index
    %c0_1 = arith.constant 0 : index
    %0 = vector.load %arg1[%c0, %c0_0, %c0_1] : memref<2x8x32xf32, #tpu.memory_space<vmem>>, vector<2x8x32xf32>
    %c0_2 = arith.constant 0 : index
    %c0_3 = arith.constant 0 : index
    %c0_4 = arith.constant 0 : index
    %c0_5 = arith.constant 0 : index
    %1 = vector.load %arg2[%c0_2, %c0_3, %c0_4, %c0_5] : memref<2x4x8x32xf32, #tpu.memory_space<vmem>>, vector<2x1x8x32xf32>
    %2 = vector.shape_cast %1 : vector<2x1x8x32xf32> to vector<2x8x32xf32>
    %cst = arith.constant dense<0.000000e+00> : vector<2x8x8xf32>
    %3 = tpu.matmul %0, %2, %cst {dimension_numbers = #tpu.dot_dimension_numbers<[2], [2], [1], [1], [0, 0, 0, 1, 1, 1], [0], [0]>} : vector<2x8x32xf32>, vector<2x8x32xf32>, vector<2x8x8xf32> -> vector<2x8x8xf32>
    %c0_6 = arith.constant 0 : index
    %c1 = arith.constant 1 : index
    %c0_7 = arith.constant 0 : index
    %c0_8 = arith.constant 0 : index
    %4 = vector.load %arg2[%c0_6, %c1, %c0_7, %c0_8] : memref<2x4x8x32xf32, #tpu.memory_space<vmem>>, vector<2x1x8x32xf32>
    %5 = vector.shape_cast %4 : vector<2x1x8x32xf32> to vector<2x8x32xf32>
    %cst_9 = arith.constant dense<0.000000e+00> : vector<2x8x8xf32>
    %6 = tpu.matmul %0, %5, %cst_9 {dimension_numbers = #tpu.dot_dimension_numbers<[2], [2], [1], [1], [0, 0, 0, 1, 1, 1], [0], [0]>} : vector<2x8x32xf32>, vector<2x8x32xf32>, vector<2x8x8xf32> -> vector<2x8x8xf32>
    %c0_10 = arith.constant 0 : index
    %c2 = arith.constant 2 : index
    %c0_11 = arith.constant 0 : index
    %c0_12 = arith.constant 0 : index
    %7 = vector.load %arg2[%c0_10, %c2, %c0_11, %c0_12] : memref<2x4x8x32xf32, #tpu.memory_space<vmem>>, vector<2x1x8x32xf32>
    %8 = vector.shape_cast %7 : vector<2x1x8x32xf32> to vector<2x8x32xf32>
    %cst_13 = arith.constant dense<0.000000e+00> : vector<2x8x8xf32>
    %9 = tpu.matmul %0, %8, %cst_13 {dimension_numbers = #tpu.dot_dimension_numbers<[2], [2], [1], [1], [0, 0, 0, 1, 1, 1], [0], [0]>} : vector<2x8x32xf32>, vector<2x8x32xf32>, vector<2x8x8xf32> -> vector<2x8x8xf32>
    %c0_14 = arith.constant 0 : index
    %c3 = arith.constant 3 : index
    %c0_15 = arith.constant 0 : index
    %c0_16 = arith.constant 0 : index
    %10 = vector.load %arg2[%c0_14, %c3, %c0_15, %c0_16] : memref<2x4x8x32xf32, #tpu.memory_space<vmem>>, vector<2x1x8x32xf32>
    %11 = vector.shape_cast %10 : vector<2x1x8x32xf32> to vector<2x8x32xf32>
    %cst_17 = arith.constant dense<0.000000e+00> : vector<2x8x8xf32>
    %12 = tpu.matmul %0, %11, %cst_17 {dimension_numbers = #tpu.dot_dimension_numbers<[2], [2], [1], [1], [0, 0, 0, 1, 1, 1], [0], [0]>} : vector<2x8x32xf32>, vector<2x8x32xf32>, vector<2x8x8xf32> -> vector<2x8x8xf32>
    %13 = arith.maximumf %3, %6 : vector<2x8x8xf32>
    %14 = arith.maximumf %13, %9 : vector<2x8x8xf32>
    %15 = arith.maximumf %14, %12 : vector<2x8x8xf32>
    %cst_18 = arith.constant 0.000000e+00 : f32
    %16 = vector.broadcast %cst_18 : f32 to vector<2x8x8xf32>
    %17 = arith.subf %3, %15 : vector<2x8x8xf32>
    %18 = math.exp %17 : vector<2x8x8xf32>
    %19 = arith.addf %16, %18 : vector<2x8x8xf32>
    %20 = arith.subf %6, %15 : vector<2x8x8xf32>
    %21 = math.exp %20 : vector<2x8x8xf32>
    %22 = arith.addf %19, %21 : vector<2x8x8xf32>
    %23 = arith.subf %9, %15 : vector<2x8x8xf32>
    %24 = math.exp %23 : vector<2x8x8xf32>
    %25 = arith.addf %22, %24 : vector<2x8x8xf32>
    %26 = arith.subf %12, %15 : vector<2x8x8xf32>
    %27 = math.exp %26 : vector<2x8x8xf32>
    %28 = arith.addf %25, %27 : vector<2x8x8xf32>
    %29 = arith.subf %12, %15 : vector<2x8x8xf32>
    %30 = math.log %28 : vector<2x8x8xf32>
    %31 = arith.subf %29, %30 : vector<2x8x8xf32>
    %c0_19 = arith.constant 0 : index
    %c0_20 = arith.constant 0 : index
    %c0_21 = arith.constant 0 : index
    %32 = vector.load %arg3[%c0_19, %c0_20, %c0_21] : memref<2x8x8xf32, #tpu.memory_space<vmem>>, vector<2x8x8xf32>
    tpu.vector_store %arg3[%c0_19, %c0_20, %c0_21], %31 {strides = array<i32>} : memref<2x8x8xf32, #tpu.memory_space<vmem>>, vector<2x8x8xf32>,
    return
  }
  func.func @transform_0(%arg0: i32) -> (i32, i32, i32) {
    %c0_i32 = arith.constant 0 : i32
    %c0_i32_0 = arith.constant 0 : i32
    %c0_i32_1 = arith.constant 0 : i32
    return %arg0, %c0_i32, %c0_i32_0 : i32, i32, i32
  }
  func.func @transform_1(%arg0: i32) -> (i32, i32, i32, i32) {
    %c0_i32 = arith.constant 0 : i32
    %c0_i32_0 = arith.constant 0 : i32
    %c0_i32_1 = arith.constant 0 : i32
    %c0_i32_2 = arith.constant 0 : i32
    return %arg0, %c0_i32, %c0_i32_0, %c0_i32_1 : i32, i32, i32, i32
  }
  func.func @transform_2(%arg0: i32) -> (i32, i32, i32) {
    %c0_i32 = arith.constant 0 : i32
    %c0_i32_0 = arith.constant 0 : i32
    %c0_i32_1 = arith.constant 0 : i32
    return %arg0, %c0_i32, %c0_i32_0 : i32, i32, i32
  }
}

</mosaic_0001>

<bundles_post_ra>
// kernel: tpu_custom_call.1
= control target key start
LH: loop header
LB: loop body
LE: loop exit
PB: predicated region body
PF: predicated region fallthrough
CT: control target
= control target key end

     0   :  { %7 = vsyncpa [#allocation3], 0  ;;  %s938_s0 = inlined_call_operand.hbm [shape: f32[2,8,32], index: 0, kind: input, shape index: {}]   ;;  %s939_s1 = inlined_call_operand.hbm [shape: f32[2,4,8,32], index: 1, kind: input, shape index: {}]   ;;  %s940_s2 = inlined_call_operand.hbm [shape: f32[2,8,8], index: 2, kind: output, shape index: {}]  }
   0x1   :  { %8 = vsyncpa [#allocation6], 0 }
   0x2   :  { %9 = vsyncpa [#allocation4], 0  ;;  %s874_s9 = smov [#allocation2]  }
   0x3   :  { %s15_s10 = sshll.u32 %s874_s9, 4  ;;  %s16_s10 = int_to_ptr.vmem [resolvable:$true] %s15_s10 }
   0x4   :  { %s816_s11 = scalar_lea.vmem %s16_s10, 256  ;;  %p821_p1 = scmp.lt.s32.totalorder %s16_s10, %s16_s10 }
   0x5   :  { %p817_p0 = scmp.ne.s32.totalorder %s16_s10, %s816_s11  ;;  %p822_p2 = scmp.lt.s32.totalorder %s816_s11, %s816_s11 }
   0x7   :  { %p823_p3 = por %p822_p2, %p821_p1 }
   0x9   :  { %p824_p4 = pnand %p823_p3, %p817_p0 }
   0xb   :  { %827 = shalt.err (!%p824_p4)
}
   0xc   :  { %s875_s12 = smov 128   ;;  %s876_s13 = smov 8  }
   0xd   :  { %21 = dma.hbm_to_vmem [thread:$0]  %s938_s0, 256, %s16_s10, [#allocation3], %s875_s12, %s875_s12, %s876_s13  }
   0xe   :  { %s877_s16 = smov [#allocation5]  }
   0xf   :  { %s27_s17 = sshll.u32 %s877_s16, 4  ;;  %s28_s17 = int_to_ptr.vmem [resolvable:$true] %s27_s17 }
  0x10   :  { %s836_s18 = scalar_lea.vmem %s28_s17, 1024  ;;  %p841_p6 = scmp.lt.s32.totalorder %s28_s17, %s28_s17 }
  0x11   :  { %p837_p5 = scmp.ne.s32.totalorder %s28_s17, %s836_s18  ;;  %p842_p7 = scmp.lt.s32.totalorder %s836_s18, %s836_s18 }
  0x13   :  { %p843_p8 = por %p842_p7, %p841_p6 }
  0x15   :  { %p844_p9 = pnand %p843_p8, %p837_p5 }
  0x17   :  { %847 = shalt.err (!%p844_p9)
}
  0x18   :  { %33 = dma.hbm_to_vmem [thread:$0]  %s939_s1, 1024, %s28_s17, [#allocation6], %s875_s12, %s875_s12, %s876_s13  }
  0x19   :  { %868 = dma.done.wait [#allocation3], 256  }
  0x1a   :  { %869 = vsyncadd [#allocation3], 4294967040 }
  0x1b   :  { %870 = dma.done.wait [#allocation6], 1024  }
  0x1c   :  { %871 = vsyncadd [#allocation6], 4294966272  ;;  %v878_v0 = vmov 0.0   ;;  %vm879_vm0 = vmmov 0   ;;  %vm44_vm1 = vcmask 261120   ;;  %v42_v1 = vld [vmem:[#allocation5] sm:$0xff] }
  0x1d   :  { %741 = vmatprep.subr.mxu0 %v878_v0  ;;  %746 = vmatprep.subr.mxu1 %v878_v0  ;;  %v43_v2 = vld [vmem:[#allocation5 + $0x20] sm:$0xff]  ;;  %v40_v3 = vld [vmem:[#allocation2] sm:$0xff]  ;;  %v41_v4 = vld [vmem:[#allocation2 + $0x8] sm:$0xff]  ;;  %vm688_vm2 = vcmask 64512   ;;  %s880_s0 = smov [#allocation7]  }
  0x1e   :  { %743 = vmatprep.mubr.msk.f32.mxu0 %vm879_vm0, %v878_v0  ;;  %748 = vmatprep.mubr.msk.f32.mxu1 %vm879_vm0, %v878_v0  ;;  %v198_v5 = vld [vmem:[#allocation5 + $0x8] sm:$0xff]  ;;  %v347_v7 = vld [vmem:[#allocation5 + $0x10] sm:$0xff]  ;;  %v496_v9 = vld [vmem:[#allocation5 + $0x18] sm:$0xff]  ;;  %s696_s1 = sshll.u32 %s880_s0, 4  ;;  %s697_s1 = int_to_ptr.vmem [resolvable:$true] %s696_s1 }
  0x1f   :  { %742 = vmatpush3.xpose.msk.msra.mxu0 %vm44_vm1, %v42_v1  ;;  %747 = vmatpush3.xpose.msk.msra.mxu1 %vm44_vm1, %v43_v2  ;;  %v199_v6 = vld [vmem:[#allocation5 + $0x28] sm:$0xff]  ;;  %v348_v8 = vld [vmem:[#allocation5 + $0x30] sm:$0xff]  ;;  %v497_v10 = vld [vmem:[#allocation5 + $0x38] sm:$0xff]  ;;  %s848_s21 = scalar_lea.vmem %s697_s1, 256  ;;  %p853_p11 = scmp.lt.s32.totalorder %s697_s1, %s697_s1 }
  0x20   :  { %751 = vmatprep.subr.mxu0 %v878_v0  ;;  %756 = vmatprep.subr.mxu1 %v878_v0  ;;  %p849_p10 = scmp.ne.s32.totalorder %s697_s1, %s848_s21  ;;  %p854_p12 = scmp.lt.s32.totalorder %s848_s21, %s848_s21 }
  0x22   :  { %744 = vmatmul.mubr.msk.f32.vlgmr.msra.gmra.mxu0 %vm44_vm1, %v40_v3  ;;  %749 = vmatmul.mubr.msk.f32.vlgmr.msra.gmra.mxu1 %vm44_vm1, %v41_v4  ;;  %p855_p13 = por %p854_p12, %p853_p11 }
  0x23   :  { %752 = vmatpush3.xpose.msk.msra.mxu0 %vm44_vm1, %v198_v5  ;;  %757 = vmatpush3.xpose.msk.msra.mxu1 %vm44_vm1, %v199_v6 }
  0x24   :  { %753 = vmatprep.mubr.msk.f32.mxu0 %vm879_vm0, %v878_v0  ;;  %758 = vmatprep.mubr.msk.f32.mxu1 %vm879_vm0, %v878_v0  ;;  %p856_p0 = pnand %p855_p13, %p849_p10 }
  0x25   :  { %761 = vmatprep.subr.mxu0 %v878_v0  ;;  %766 = vmatprep.subr.mxu1 %v878_v0 }
  0x26   :  { %754 = vmatmul.mubr.msk.f32.vlgmr.msra.gmra.mxu0 %vm44_vm1, %v40_v3  ;;  %759 = vmatmul.mubr.msk.f32.vlgmr.msra.gmra.mxu1 %vm44_vm1, %v41_v4 }
  0x27   :  { %762 = vmatpush3.xpose.msk.msra.mxu0 %vm44_vm1, %v347_v7  ;;  %767 = vmatpush3.xpose.msk.msra.mxu1 %vm44_vm1, %v348_v8 }
  0x28   :  { %763 = vmatprep.mubr.msk.f32.mxu0 %vm879_vm0, %v878_v0  ;;  %768 = vmatprep.mubr.msk.f32.mxu1 %vm879_vm0, %v878_v0 }
  0x29   :  { %771 = vmatprep.subr.mxu0 %v878_v0  ;;  %776 = vmatprep.subr.mxu1 %v878_v0 }
  0x2a   :  { %764 = vmatmul.mubr.msk.f32.vlgmr.msra.gmra.mxu0 %vm44_vm1, %v40_v3  ;;  %769 = vmatmul.mubr.msk.f32.vlgmr.msra.gmra.mxu1 %vm44_vm1, %v41_v4 }
  0x2b   :  { %772 = vmatpush3.xpose.msk.msra.mxu0 %vm44_vm1, %v496_v9  ;;  %777 = vmatpush3.xpose.msk.msra.mxu1 %vm44_vm1, %v497_v10 }
  0x2c   :  { %773 = vmatprep.mubr.msk.f32.mxu0 %vm879_vm0, %v878_v0  ;;  %778 = vmatprep.mubr.msk.f32.mxu1 %vm879_vm0, %v878_v0 }
  0x2e   :  { %774 = vmatmul.mubr.msk.f32.vlgmr.msra.gmra.mxu0 %vm44_vm1, %v40_v3  ;;  %779 = vmatmul.mubr.msk.f32.vlgmr.msra.gmra.mxu1 %vm44_vm1, %v41_v4 }
  0xe2   :  { %v117_v11 = vpop.f32.mrf.mxu0  ;;  %v193_v12 = vpop.f32.mrf.mxu1 }
  0xe4   :  { %v745_v13 = vpop.f32.mrf.mxu0  ;;  %v750_v14 = vpop.f32.mrf.mxu1 }
  0xe6   :  { %v269_v15 = vpop.f32.mrf.mxu0  ;;  %v342_v16 = vpop.f32.mrf.mxu1 }
  0xe7   :  { %v644_v21 = vmax.f32 %v117_v11, %v269_v15  ;;  %v645_v22 = vmax.f32 %v193_v12, %v342_v16 }
  0xe8   :  { %v755_v17 = vpop.f32.mrf.mxu0  ;;  %v760_v18 = vpop.f32.mrf.mxu1 }
  0xea   :  { %v418_v19 = vpop.f32.mrf.mxu0  ;;  %v491_v20 = vpop.f32.mrf.mxu1 }
  0xeb   :  { %v646_v25 = vmax.f32 %v644_v21, %v418_v19  ;;  %v647_v26 = vmax.f32 %v645_v22, %v491_v20 }
  0xec   :  { %v765_v23 = vpop.f32.mrf.mxu0  ;;  %v770_v24 = vpop.f32.mrf.mxu1 }
  0xee   :  { %v567_v27 = vpop.f32.mrf.mxu0  ;;  %v640_v28 = vpop.f32.mrf.mxu1 }
  0xef   :  { %v648_v29 = vmax.f32 %v646_v25, %v567_v27  ;;  %v649_v30 = vmax.f32 %v647_v26, %v640_v28 }
  0xf0   :  { %v775_v31 = vpop.f32.mrf.mxu0  ;;  %v780_v32 = vpop.f32.mrf.mxu1 }
  0xf1   :  { %v650_v33 = vsub.f32 %v117_v11, %v648_v29  ;;  %v658_v34 = vsub.f32 %v269_v15, %v648_v29  ;;  %v666_v35 = vsub.f32 %v418_v19, %v648_v29  ;;  %v674_v36 = vsub.f32 %v567_v27, %v648_v29 }
  0xf2   :  { %v651_v37 = vsub.f32 %v193_v12, %v649_v30  ;;  %v659_v38 = vsub.f32 %v342_v16, %v649_v30  ;;  %v667_v43 = vsub.f32 %v491_v20, %v649_v30  ;;  %v675_v46 = vsub.f32 %v640_v28, %v649_v30 }
  0xf3   :  { %v652_v39 = vmul.f32 1.442695, %v650_v33  ;;  %v660_v40 = vmul.f32 1.442695, %v658_v34  ;;  %v668_v41 = vmul.f32 1.442695, %v666_v35 }
  0xf4   :  { %v676_v42 = vmul.f32 1.442695, %v674_v36  ;;  %v654_v44 = vmul.f32 1.442695, %v651_v37  ;;  %v662_v45 = vmul.f32 1.442695, %v659_v38 }
  0xf5   :  { %788 = vpow2.f32 %v652_v39  ;;  %v670_v47 = vmul.f32 1.442695, %v667_v43  ;;  %v678_v48 = vmul.f32 1.442695, %v675_v46 }
  0xf6   :  { %790 = vpow2.f32 %v660_v40 }
  0xf7   :  { %792 = vpow2.f32 %v668_v41 }
  0xf8   :  { %794 = vpow2.f32 %v676_v42 }
  0xf9   :  { %796 = vpow2.f32 %v654_v44 }
  0xfa   :  { %798 = vpow2.f32 %v662_v45 }
  0xfb   :  { %800 = vpow2.f32 %v670_v47 }
  0xfc   :  { %802 = vpow2.f32 %v678_v48 }
 0x102   :  { %v789_v49 = vpop.eup %788 }
 0x103   :  { %v791_v50 = vpop.eup %790 }
 0x104   :  { %v793_v51 = vpop.eup %792  ;;  %v664_v52 = vadd.f32 %v791_v50, %v789_v49 }
 0x105   :  { %v795_v53 = vpop.eup %794 }
 0x106   :  { %v797_v54 = vpop.eup %796  ;;  %v672_v55 = vadd.f32 %v793_v51, %v664_v52 }
 0x107   :  { %v799_v56 = vpop.eup %798 }
 0x108   :  { %v680_v57 = vadd.f32 %v795_v53, %v672_v55  ;;  %v665_v58 = vadd.f32 %v799_v56, %v797_v54  ;;  %v801_v59 = vpop.eup %800 }
 0x109   :  { %v803_v61 = vpop.eup %802 }
 0x10a   :  { %804 = vlog2.f32 %v680_v57  ;;  %v673_v60 = vadd.f32 %v801_v59, %v665_v58 }
 0x10c   :  { %v681_v62 = vadd.f32 %v803_v61, %v673_v60 }
 0x10e   :  { %806 = vlog2.f32 %v681_v62 }
 0x117   :  { %v805_v63 = vpop.eup %804 }
 0x118   :  { %v683_v0 = vmul.f32 0.6931472, %v805_v63 }
 0x11a   :  { %v686_v1 = vsub.f32 %v674_v36, %v683_v0 }
 0x11b   :  { %v807_v2 = vpop.eup %806 }
 0x11c   :  { %v685_v3 = vmul.f32 0.6931472, %v807_v2  ;;  %689 = vst.msk [vmem:[#allocation7] sm:$0xff] %vm688_vm2, %v686_v1 }
 0x11e   :  { %v687_v4 = vsub.f32 %v675_v46, %v685_v3 }
 0x120   :  { %690 = vst.msk [vmem:[#allocation7 + $0x8] sm:$0xff] %vm688_vm2, %v687_v4 }
 0x121   :  { %859 = shalt.err (!%p856_p0)
}
 0x122   :  { %702 = dma.vmem_to_hbm [thread:$0]  %s697_s1, 256, %s940_s2, [#allocation4], %s875_s12, %s875_s12, %s876_s13  }
 0x123   :  { %872 = dma.done.wait [#allocation4], 256  }
 0x124   :  { %873 = vsyncadd [#allocation4], 4294967040 }
 0x125   :  { %706 = vsyncpa [#allocation3], 1 }
 0x126   :  { %707 = vsyncpa [#allocation6], 1 }
 0x127   :  { %708 = vsyncpa [#allocation4], 1 }

</bundles_post_ra>
